<compile_context>
chip_gen: v6e
topology: v6e:2x2x1
jax: 0.10.0
libtpu: 0.0.40
codegen_flags: <defaults>
</compile_context>

<pallas_src>
import jax
import jax.numpy as jnp
from jax.experimental import pallas as pl
from jax.experimental.pallas import tpu as pltpu


def mlp_kernel(x_ref, w1_ref, b1_ref, w2_ref, b2_ref, w3_ref, b3_ref, o_ref):
    # Three MXU matmuls (bf16 in, f32 accumulate) + VPU bias-add/ReLU in f32, fused.
    x = x_ref[...]                                                         # bf16 [bm, D_in]
    h1 = jnp.dot(x, w1_ref[...], preferred_element_type=jnp.float32) + b1_ref[...]
    h1 = jnp.maximum(h1, 0.0).astype(w2_ref.dtype)                         # bf16 for next MXU pass
    h2 = jnp.dot(h1, w2_ref[...], preferred_element_type=jnp.float32) + b2_ref[...]
    h2 = jnp.maximum(h2, 0.0).astype(w3_ref.dtype)
    out = jnp.dot(h2, w3_ref[...], preferred_element_type=jnp.float32) + b3_ref[...]
    o_ref[...] = out.astype(o_ref.dtype)


def _pick_bm(B):
    """Batch tile: fill the MXU (128/256 rows) and keep >=2 grid steps for v7x megacore."""
    for cand in (256, 128):
        if B % cand == 0 and B // cand >= 2:
            return cand
    if B % 256 == 0:
        return 256
    if B % 128 == 0:
        return 128
    # Small/medium batches: split in two for v7x's 2 TensorCores if the tile stays
    # 16-row aligned (bf16 sublane packing); otherwise one full-batch tile.
    if B % 32 == 0:
        return B // 2
    return B


def mlp_forward(x, w1, b1, w2, b2, w3, b3, *, bm=None):
    B, D_in = x.shape
    H = w1.shape[1]
    O = w3.shape[1]
    O_pad = max(128, ((O + 127) // 128) * 128)   # lane-dense output store

    if bm is None:
        bm = _pick_bm(B)
    assert B % bm == 0, (B, bm)

    cdt = jnp.bfloat16
    xb = x.astype(cdt)
    w1b = w1.astype(cdt)
    w2b = w2.astype(cdt)
    w3b = jnp.pad(w3.astype(cdt), ((0, 0), (0, O_pad - O)))
    b1f = b1.astype(jnp.float32)
    b2f = b2.astype(jnp.float32)
    b3f = jnp.pad(b3.astype(jnp.float32), ((0, 0), (0, O_pad - O)))

    out_padded = pl.pallas_call(
        mlp_kernel,
        out_shape=jax.ShapeDtypeStruct((B, O_pad), jnp.float32),
        grid=(B // bm,),
        in_specs=[
            pl.BlockSpec((bm, D_in), lambda i: (i, 0)),    # x tile over batch
            pl.BlockSpec((D_in, H), lambda i: (0, 0)),     # W1 (resident)
            pl.BlockSpec((1, H), lambda i: (0, 0)),        # b1
            pl.BlockSpec((H, H), lambda i: (0, 0)),        # W2
            pl.BlockSpec((1, H), lambda i: (0, 0)),        # b2
            pl.BlockSpec((H, O_pad), lambda i: (0, 0)),    # W3 (lane-padded)
            pl.BlockSpec((1, O_pad), lambda i: (0, 0)),    # b3 (lane-padded)
        ],
        out_specs=pl.BlockSpec((bm, O_pad), lambda i: (i, 0)),
        compiler_params=pltpu.CompilerParams(dimension_semantics=("parallel",)),
    )(xb, w1b, b1f, w2b, b2f, w3b, b3f)
    return out_padded[:, :O]


def init_params(key, input_size=784, hidden_size=256, output_size=10):
    """Deterministic init mimicking nn.Linear default (U[-1/sqrt(fan_in), 1/sqrt(fan_in)])."""
    ks = jax.random.split(key, 6)

    def linear(kw, kb, fan_in, fan_out):
        bound = 1.0 / jnp.sqrt(jnp.float32(fan_in))
        w = jax.random.uniform(kw, (fan_in, fan_out), jnp.float32, -bound, bound)
        b = jax.random.uniform(kb, (1, fan_out), jnp.float32, -bound, bound)
        return w, b

    w1, b1 = linear(ks[0], ks[1], input_size, hidden_size)
    w2, b2 = linear(ks[2], ks[3], hidden_size, hidden_size)
    w3, b3 = linear(ks[4], ks[5], hidden_size, output_size)
    return w1, b1, w2, b2, w3, b3


def reference_forward_f32(x, w1, b1, w2, b2, w3, b3):
    h1 = jnp.maximum(x @ w1 + b1, 0.0)
    h2 = jnp.maximum(h1 @ w2 + b2, 0.0)
    return h2 @ w3 + b3


def reference_forward_bf16(x, w1, b1, w2, b2, w3, b3):
    """Reference applying the same bf16 weight/activation quantization as the kernel."""
    bf = jnp.bfloat16
    h1 = jnp.dot(x.astype(bf), w1.astype(bf), preferred_element_type=jnp.float32) + b1
    h1 = jnp.maximum(h1, 0.0)
    h2 = jnp.dot(h1.astype(bf), w2.astype(bf), preferred_element_type=jnp.float32) + b2
    h2 = jnp.maximum(h2, 0.0)
    return jnp.dot(h2.astype(bf), w3.astype(bf), preferred_element_type=jnp.float32) + b3


if __name__ == "__main__":
    INPUT_SIZE, HIDDEN_SIZE, OUTPUT_SIZE = 784, 256, 10
    BATCH = 32   # small demo batch -> bm=16, 2 parallel grid steps (both v7x TCs busy)

    key = jax.random.PRNGKey(0)
    k_x, k_p = jax.random.split(key)
    x = jax.random.normal(k_x, (BATCH, INPUT_SIZE), dtype=jnp.float32)
    params = init_params(k_p, INPUT_SIZE, HIDDEN_SIZE, OUTPUT_SIZE)

    out = mlp_forward(x, *params)
    out = jax.block_until_ready(out)
    assert out.shape == (BATCH, OUTPUT_SIZE)

    # Tight check vs. a reference with identical bf16 quantization + f32 accumulation.
    ref_bf16 = reference_forward_bf16(x, *params)
    assert jnp.allclose(out, ref_bf16, atol=1e-2, rtol=1e-2), "mismatch vs bf16-matched reference"

    # Sanity check vs. the pure-f32 reference (loose tolerance for bf16 weight cast).
    ref_f32 = reference_forward_f32(x, *params)
    assert jnp.allclose(out, ref_f32, atol=1e-1, rtol=1e-1), "mismatch vs f32 reference"

    print("KERNEL_OK")
</pallas_src>

<mosaic_0001>
module attributes {stable_mosaic.version = 11 : i64} {
  func.func @mlp_kernel(%arg0: i32, %arg1: memref<16x784xbf16, #tpu.memory_space<vmem>>, %arg2: memref<784x256xbf16, #tpu.memory_space<vmem>>, %arg3: memref<1x256xf32, #tpu.memory_space<vmem>>, %arg4: memref<256x256xbf16, #tpu.memory_space<vmem>>, %arg5: memref<1x256xf32, #tpu.memory_space<vmem>>, %arg6: memref<256x128xbf16, #tpu.memory_space<vmem>>, %arg7: memref<1x128xf32, #tpu.memory_space<vmem>>, %arg8: memref<16x128xf32, #tpu.memory_space<vmem>>) attributes {dimension_semantics = [#tpu.dimension_semantics<parallel>], iteration_bounds = array<i64: 2>, scalar_prefetch = 0 : i64, scratch_operands = 0 : i64, tpu.core_type = #tpu.core_type<tc>, window_params = [{transform_indices = @transform_0, window_bounds = array<i64: 16, 784>}, {pipeline_mode = #tpu.pipeline_mode<synchronous>, transform_indices = @transform_1, window_bounds = array<i64: 784, 256>}, {pipeline_mode = #tpu.pipeline_mode<synchronous>, transform_indices = @transform_2, window_bounds = array<i64: 1, 256>}, {pipeline_mode = #tpu.pipeline_mode<synchronous>, transform_indices = @transform_3, window_bounds = array<i64: 256, 256>}, {pipeline_mode = #tpu.pipeline_mode<synchronous>, transform_indices = @transform_4, window_bounds = array<i64: 1, 256>}, {pipeline_mode = #tpu.pipeline_mode<synchronous>, transform_indices = @transform_5, window_bounds = array<i64: 256, 128>}, {pipeline_mode = #tpu.pipeline_mode<synchronous>, transform_indices = @transform_6, window_bounds = array<i64: 1, 128>}, {transform_indices = @transform_7, window_bounds = array<i64: 16, 128>}]} {
    %c0 = arith.constant 0 : index
    %c0_0 = arith.constant 0 : index
    %0 = vector.load %arg1[%c0, %c0_0] : memref<16x784xbf16, #tpu.memory_space<vmem>>, vector<16x784xbf16>
    %c0_1 = arith.constant 0 : index
    %c0_2 = arith.constant 0 : index
    %1 = vector.load %arg2[%c0_1, %c0_2] : memref<784x256xbf16, #tpu.memory_space<vmem>>, vector<784x256xbf16>
    %cst = arith.constant dense<0.000000e+00> : vector<16x256xf32>
    %2 = tpu.matmul %0, %1, %cst {dimension_numbers = #tpu.dot_dimension_numbers<[1], [0], [0], [1], [0, 0, 1, 1], [], []>} : vector<16x784xbf16>, vector<784x256xbf16>, vector<16x256xf32> -> vector<16x256xf32>
    %c0_3 = arith.constant 0 : index
    %c0_4 = arith.constant 0 : index
    %3 = vector.load %arg3[%c0_3, %c0_4] : memref<1x256xf32, #tpu.memory_space<vmem>>, vector<1x256xf32>
    %4 = vector.broadcast %3 : vector<1x256xf32> to vector<16x256xf32>
    %5 = arith.addf %2, %4 : vector<16x256xf32>
    %cst_5 = arith.constant 0.000000e+00 : f32
    %6 = vector.broadcast %cst_5 : f32 to vector<16x256xf32>
    %7 = arith.maximumf %5, %6 : vector<16x256xf32>
    %8 = arith.truncf %7 : vector<16x256xf32> to vector<16x256xbf16>
    %c0_6 = arith.constant 0 : index
    %c0_7 = arith.constant 0 : index
    %9 = vector.load %arg4[%c0_6, %c0_7] : memref<256x256xbf16, #tpu.memory_space<vmem>>, vector<256x256xbf16>
    %cst_8 = arith.constant dense<0.000000e+00> : vector<16x256xf32>
    %10 = tpu.matmul %8, %9, %cst_8 {dimension_numbers = #tpu.dot_dimension_numbers<[1], [0], [0], [1], [0, 0, 1, 1], [], []>} : vector<16x256xbf16>, vector<256x256xbf16>, vector<16x256xf32> -> vector<16x256xf32>
    %c0_9 = arith.constant 0 : index
    %c0_10 = arith.constant 0 : index
    %11 = vector.load %arg5[%c0_9, %c0_10] : memref<1x256xf32, #tpu.memory_space<vmem>>, vector<1x256xf32>
    %12 = vector.broadcast %11 : vector<1x256xf32> to vector<16x256xf32>
    %13 = arith.addf %10, %12 : vector<16x256xf32>
    %cst_11 = arith.constant 0.000000e+00 : f32
    %14 = vector.broadcast %cst_11 : f32 to vector<16x256xf32>
    %15 = arith.maximumf %13, %14 : vector<16x256xf32>
    %16 = arith.truncf %15 : vector<16x256xf32> to vector<16x256xbf16>
    %c0_12 = arith.constant 0 : index
    %c0_13 = arith.constant 0 : index
    %17 = vector.load %arg6[%c0_12, %c0_13] : memref<256x128xbf16, #tpu.memory_space<vmem>>, vector<256x128xbf16>
    %cst_14 = arith.constant dense<0.000000e+00> : vector<16x128xf32>
    %18 = tpu.matmul %16, %17, %cst_14 {dimension_numbers = #tpu.dot_dimension_numbers<[1], [0], [0], [1], [0, 0, 1, 1], [], []>} : vector<16x256xbf16>, vector<256x128xbf16>, vector<16x128xf32> -> vector<16x128xf32>
    %c0_15 = arith.constant 0 : index
    %c0_16 = arith.constant 0 : index
    %19 = vector.load %arg7[%c0_15, %c0_16] : memref<1x128xf32, #tpu.memory_space<vmem>>, vector<1x128xf32>
    %20 = vector.broadcast %19 : vector<1x128xf32> to vector<16x128xf32>
    %21 = arith.addf %18, %20 : vector<16x128xf32>
    %c0_17 = arith.constant 0 : index
    %c0_18 = arith.constant 0 : index
    %22 = vector.load %arg8[%c0_17, %c0_18] : memref<16x128xf32, #tpu.memory_space<vmem>>, vector<16x128xf32>
    tpu.vector_store %arg8[%c0_17, %c0_18], %21 {strides = array<i32>} : memref<16x128xf32, #tpu.memory_space<vmem>>, vector<16x128xf32>,
    return
  }
  func.func @transform_0(%arg0: i32) -> (i32, i32) {
    %c0_i32 = arith.constant 0 : i32
    %c0_i32_0 = arith.constant 0 : i32
    return %arg0, %c0_i32 : i32, i32
  }
  func.func @transform_1(%arg0: i32) -> (i32, i32) {
    %c0_i32 = arith.constant 0 : i32
    %c0_i32_0 = arith.constant 0 : i32
    %c0_i32_1 = arith.constant 0 : i32
    return %c0_i32, %c0_i32_0 : i32, i32
  }
  func.func @transform_2(%arg0: i32) -> (i32, i32) {
    %c0_i32 = arith.constant 0 : i32
    %c0_i32_0 = arith.constant 0 : i32
    %c0_i32_1 = arith.constant 0 : i32
    return %c0_i32, %c0_i32_0 : i32, i32
  }
  func.func @transform_3(%arg0: i32) -> (i32, i32) {
    %c0_i32 = arith.constant 0 : i32
    %c0_i32_0 = arith.constant 0 : i32
    %c0_i32_1 = arith.constant 0 : i32
    return %c0_i32, %c0_i32_0 : i32, i32
  }
  func.func @transform_4(%arg0: i32) -> (i32, i32) {
    %c0_i32 = arith.constant 0 : i32
    %c0_i32_0 = arith.constant 0 : i32
    %c0_i32_1 = arith.constant 0 : i32
    return %c0_i32, %c0_i32_0 : i32, i32
  }
  func.func @transform_5(%arg0: i32) -> (i32, i32) {
    %c0_i32 = arith.constant 0 : i32
    %c0_i32_0 = arith.constant 0 : i32
    %c0_i32_1 = arith.constant 0 : i32
    return %c0_i32, %c0_i32_0 : i32, i32
  }
  func.func @transform_6(%arg0: i32) -> (i32, i32) {
    %c0_i32 = arith.constant 0 : i32
    %c0_i32_0 = arith.constant 0 : i32
    %c0_i32_1 = arith.constant 0 : i32
    return %c0_i32, %c0_i32_0 : i32, i32
  }
  func.func @transform_7(%arg0: i32) -> (i32, i32) {
    %c0_i32 = arith.constant 0 : i32
    %c0_i32_0 = arith.constant 0 : i32
    return %arg0, %c0_i32 : i32, i32
  }
}

</mosaic_0001>

<bundles_post_ra>
// kernel: tpu_custom_call.1
= control target key start
LH: loop header
LB: loop body
LE: loop exit
PB: predicated region body
PF: predicated region fallthrough
CT: control target
= control target key end

     0   :  { %s2677_s0 = inlined_call_operand.hbm [shape: bf16[32,784], index: 0, kind: input, shape index: {}]   ;;  %s2678_s1 = inlined_call_operand.hbm [shape: bf16[784,256], index: 1, kind: input, shape index: {}]   ;;  %s2679_s2 = inlined_call_operand.vmem [shape: f32[1,256], index: 2, kind: input, shape index: {}]   ;;  %s2680_s3 = inlined_call_operand.hbm [shape: bf16[256,256], index: 3, kind: input, shape index: {}]   ;;  %s2681_s4 = inlined_call_operand.vmem [shape: f32[1,256], index: 4, kind: input, shape index: {}]   ;;  %s2682_s5 = inlined_call_operand.hbm [shape: bf16[256,128], index: 5, kind: input, shape index: {}]   ;;  %s2683_s6 = inlined_call_operand.vmem [shape: f32[1,128], index: 6, kind: input, shape index: {}]   ;;  %s2684_s7 = inlined_call_operand.hbm [shape: f32[32,128], index: 7, kind: output, shape index: {}]  }
   0x1   :  { %2689 = sst [smem:[#allocation15_spill]] %s2678_s1 }
   0x2   :  { %12 = vsyncpa [#allocation3], 0 }
   0x3   :  { %14 = vsyncpa [#allocation3 + $0x1], 0 }
   0x4   :  { %15 = vsyncpa [#allocation6], 0 }
   0x5   :  { %16 = vsyncpa [#allocation9], 0 }
   0x6   :  { %17 = vsyncpa [#allocation4], 0 }
   0x7   :  { %19 = vsyncpa [#allocation4 + $0x1], 0  ;;  %s2458_s24 = smov 0   ;;  %s2460_s25 = smov 0  }
   0x8   :  { %s2462_s26 = smov 0   ;;  %s2464_s27 = smov 0  }
   0x9 LB: > { %s2479_s28 = sadd.s32 4294967295, %s2402_s27   ;;  %s1717_s29 = sadd.s32 4294967294, %s2402_s27   ;;  %s2402_s27 = sphi %s2464_s27, %s2710_s27   ;;  %s2398_s26 = sphi %s2462_s26, %s2709_s26   ;;  %s2394_s25 = sphi %s2460_s25, %s2708_s25   ;;  %s2390_s24 = sphi %s2458_s24, %s2707_s24  }
   0xa   : > { %p45_p0 = scmp.ne.s32.totalorder %s2394_s25, %s2390_s24  ;;  %p2685_p1 = scmp.eq.s32.totalorder %s2479_s28, 0 }
   0xb   : > { %p201_p3 = scmp.eq.s32.totalorder %s1717_s29, 1  ;;  %p1718_p5 = scmp.ge.s32.totalorder %s2402_s27, 1 }
   0xc   : > { %p2488_p4 = por %p2685_p1, %p45_p0  ;;  %p208_p7 = scmp.lt.s32.totalorder %s2402_s27, 3 }
   0xd   : > { %p2493_p6 = por %p201_p3, %p45_p0  ;;  %s2404_s10 = smov [#allocation5]  }
   0xe   : > { %s2690_s30 = scalar_select %p2488_p4, 1, 0 }
   0xf   : > { %s2691_s8 = scalar_select %p2493_p6, 1, 0 }
  0x10   : > { %p2498_p8 = pnand %p1718_p5, %p208_p7  ;;  %s220_s11 = sshll.u32 %s2404_s10, 4  ;;  %s221_s11 = int_to_ptr.vmem [resolvable:$true] %s220_s11 }
  0x11   : > { %s2405_s13 = smov [#allocation7]   ;;  %s2406_s15 = smov [#allocation8]  }
  0x12   : > { %s2692_s9 = scalar_select %p2498_p8, 1, 0 }
  0x13   : > { %p1933_p9 = pneg %p2498_p8  ;;  %s236_s14 = sshll.u32 %s2405_s13, 4  ;;  %s237_s14 = int_to_ptr.vmem [resolvable:$true] %s236_s14 }
  0x14   : > { %s252_s16 = sshll.u32 %s2406_s15, 4  ;;  %s2235_s17 = scalar_lea.vmem %s221_s11, 12544  ;;  %s253_s16 = int_to_ptr.vmem [resolvable:$true] %s252_s16 }
  0x15   : > { %p2507_p11 = pnand %p1933_p9, %p2685_p1  ;;  %p2236_p13 = scmp.ne.s32.totalorder %s221_s11, %s2235_s17 }
  0x16   : > { %p2243_p5 = scmp.lt.s32.totalorder %s221_s11, %s221_s11  ;;  %p2244_p7 = scmp.lt.s32.totalorder %s2235_s17, %s2235_s17 }
  0x17   : > { %p2226_p12 = pneg %p2507_p11 }
  0x18   : > { %p2245_p9 = por %p2244_p7, %p2243_p5 }
  0x19   : > { %p2238_p0 = pnand %p2236_p13, %p2226_p12 }
  0x1b   : > { %p2239_p3 = pneg %p2238_p0 }
  0x1d   : > { %p2246_p10 = pnand %p2245_p9, %p2239_p3 }
  0x1f   : > { %2249 = shalt.err (!%p2246_p10)
}
  0x20   : > { %s2407_s18 = smov 128   ;;  %s2408_s19 = smov 8  }
  0x21   : > { %s2694_s1 = sld [smem:[#allocation15_spill]]  ;;  %s2261_s22 = scalar_lea.vmem %s237_s14, 4096 }
  0x22   : > { %p2262_p1 = scmp.ne.s32.totalorder %s237_s14, %s2261_s22  ;;  %p2269_p2 = scmp.lt.s32.totalorder %s237_s14, %s237_s14 }
  0x23   : > { %p2270_p6 = scmp.lt.s32.totalorder %s2261_s22, %s2261_s22 }
  0x24   : > { %p2264_p13 = pnand %p2262_p1, %p2226_p12 }
  0x25   : > { %p2271_p5 = por %p2270_p6, %p2269_p2 }
  0x26   : > { %p2265_p0 = pneg %p2264_p13 }
  0x27   : > { %1936 = dma.hbm_to_vmem [thread:$0]  (!%p2507_p11), %s2694_s1, 12544, %s221_s11, [#allocation6], %s2407_s18, %s2407_s18, %s2408_s19  }
  0x28   : > { %p2272_p3 = pnand %p2271_p5, %p2265_p0 }
  0x2a   : > { %2275 = shalt.err (!%p2272_p3)
}
  0x2b   : > { %1939 = dma.hbm_to_vmem [thread:$0]  (!%p2507_p11), %s2680_s3, 4096, %s237_s14, [#allocation6], %s2407_s18, %s2407_s18, %s2408_s19  }
  0x2c   : > { %s2287_s10 = scalar_lea.vmem %s253_s16, 2048  ;;  %p2295_p9 = scmp.lt.s32.totalorder %s253_s16, %s253_s16 }
  0x2d   : > { %p2288_p10 = scmp.ne.s32.totalorder %s253_s16, %s2287_s10  ;;  %p2296_p13 = scmp.lt.s32.totalorder %s2287_s10, %s2287_s10 }
  0x2f   : > { %p2290_p7 = pnand %p2288_p10, %p2226_p12  ;;  %p2297_p4 = por %p2296_p13, %p2295_p9 }
  0x31   : > { %p2291_p1 = pneg %p2290_p7 }
  0x33   : > { %p2298_p2 = pnand %p2297_p4, %p2291_p1 }
  0x35   : > { %2301 = shalt.err (!%p2298_p2)
}
  0x36   : > { %s2409_s11 = smov 64   ;;  %s2410_s13 = smov 4  }
  0x37   : > { %1942 = dma.hbm_to_vmem [thread:$0]  (!%p2507_p11), %s2682_s5, 2048, %s253_s16, [#allocation9], %s2409_s11, %s2409_s11, %s2410_s13  }
  0x38   : > { %s2538_s17 = sadd.s32 1, %s2402_s27   ;;  %s32_s19 = sadd.s32 1, %s2398_s26 }
  0x39   : > { %s29_s18 = ssub.s32 %s2402_s27, %s2538_s17  ;;  %p39_p6 = scmp.ne.s32.totalorder %s2398_s26, %s2394_s25 }
  0x3a   : > { %p30_p4 = scmp.eq.s32.totalorder %s29_s18, 0  ;;  %p40_p12 = scmp.eq.s32.totalorder %s2402_s27, 0 }
  0x3b   : > { %p1954_p0 = scmp.lt.s32.totalorder %s2402_s27, 2  ;;  %p2695_p3 = scmp.eq.s32.totalorder %s2479_s28, 1 }
  0x3c   : > { %s2548_s20 = scalar_select %p30_p4, %s2398_s26, %s32_s19  }
  0x3d   : > { %p41_p5 = por %p40_p12, %p39_p6  ;;  %p2552_p10 = por %p2695_p3, %p39_p6 }
  0x3e   : > { %s269_s12 = sand.u32 1, %s2398_s26   ;;  %s1915_s22 = smul.u32 896, %s2402_s27 }
  0x3f   : > { %s2696_s21 = scalar_select %p2552_p10, 1, 0 }
  0x40   : > { %s1914_s16 = smul.u32 56, %s269_s12  ;;  %s2561_s10 = scalar_lea.hbm %s2677_s0, %s1915_s22 }
  0x41   : > { %p2563_p11 = pnand %p1954_p0, %p41_p5  ;;  %s2569_s15 = scalar_lea.sflag [#allocation3], %s269_s12 }
  0x42   : > { %s273_s13 = scalar_lea.vmem [#allocation2], %s1914_s16  ;;  %s2302_s18 = scalar_lea.hbm %s2561_s10, 896 }
  0x43   : > { %s281_s14 = sshll.u32 %s273_s13, 4  ;;  %p2303_p7 = scmp.ne.s32.totalorder %s2561_s10, %s2302_s18  ;;  %s2567_s14 = int_to_ptr.vmem [resolvable:$true] %s281_s14 }
  0x44   : > { %p2304_p1 = pneg %p2563_p11  ;;  %s2307_s23 = scalar_lea.hbm %s2677_s0, 1792 }
  0x45   : > { %p2308_p2 = scmp.lt.s32.totalorder %s2561_s10, %s2677_s0  ;;  %p2309_p4 = scmp.lt.s32.totalorder %s2307_s23, %s2302_s18 }
  0x46   : > { %p2305_p9 = pnand %p2304_p1, %p2303_p7 }
  0x47   : > { %p2310_p6 = por %p2309_p4, %p2308_p2 }
  0x48   : > { %p2306_p13 = pneg %p2305_p9 }
  0x4a   : > { %p2311_p12 = pnand %p2310_p6, %p2306_p13 }
  0x4c   : > { %2314 = shalt.err (!%p2311_p12)
}
  0x4d   : > { %s2315_s12 = scalar_lea.vmem %s2567_s14, 896  ;;  %s2411_s16 = smov [#allocation2]  }
  0x4e   : > { %p2316_p0 = scmp.ne.s32.totalorder %s2567_s14, %s2315_s12  ;;  %s2320_s13 = sshll.u32 %s2411_s16, 4  ;;  %s2321_s13 = int_to_ptr.vmem [resolvable:$false] %s2320_s13 }
  0x4f   : > { %s2322_s19 = scalar_lea.vmem %s2321_s13, 1792  ;;  %p2323_p7 = scmp.lt.s32.totalorder %s2567_s14, %s2321_s13 }
  0x50   : > { %p2318_p5 = pnand %p2316_p0, %p2304_p1  ;;  %p2324_p9 = scmp.lt.s32.totalorder %s2322_s19, %s2315_s12 }
  0x52   : > { %p2319_p3 = pneg %p2318_p5  ;;  %p2325_p10 = por %p2324_p9, %p2323_p7 }
  0x54   : > { %p2326_p8 = pnand %p2325_p10, %p2319_p3 }
  0x56   : > { %2329 = shalt.err (!%p2326_p8)
}
  0x57   : > { %s2412_s1 = smov 448   ;;  %s2413_s18 = smov 28  }
  0x58   : > { %1946 = dma.hbm_to_vmem [thread:$0]  (!%p2563_p11), %s2561_s10, 896, %s2567_s14, %s2569_s15, %s2412_s1, %s2412_s1, %s2413_s18  }
  0x59   : > { %p2698_p1 = scmp.ne.s32.totalorder %s2692_s9, 0 }
  0x5a   : > { %s2593_s22 = sand.u32 (!%p2698_p1), 1, %s2394_s25   ;;  %p2699_p8 = scmp.ne.s32.totalorder (!%p2698_p1), %s2690_s30, 0 }
  0x5b   : > { %293 = sbr.rel (%p2698_p1) target bundleno = 863 (0x35f), region = 48  ;;  %s296_s29 = scalar_lea.sflag (!%p2698_p1), [#allocation3], %s2593_s22 }
  0x5c   : > { %s1916_s23 = smul.u32 (!%p2698_p1), 56, %s2593_s22 }
  0x5e   : > { %s2597_s12 = scalar_lea.vmem (!%p2698_p1), [#allocation2], %s1916_s23 }
  0x60   : > { %2373 = dma.done.wait (%p2699_p8), %s296_s29, 896  }
  0x61   : > { %2375 = vsyncadd (%p2699_p8), %s296_s29, 4294966400  ;;  %p2700_p10 = scmp.eq.s32.totalorder %s2479_s28, 0 }
  0x63   : > { %2377 = dma.done.wait (%p2700_p10), [#allocation6], 16640   ;;  %p2701_p11 = pmov %p2700_p10 }
  0x64   : > { %p2702_p13 = pmov %p2700_p10 }
  0x65   : > { %2379 = vsyncadd (%p2701_p11), [#allocation6], 4294950656 }
  0x66   : > { %2381 = dma.done.wait (%p2702_p13), [#allocation9], 2048   ;;  %p2703_p2 = pmov %p2700_p10 }
  0x67   : > { %v2003_v0 = vld [vmem:[#allocation5 + $0x74] ss:$8 sps:$4 sm:$0xff]   ;;  %v2005_v1 = vld [vmem:[#allocation5 + $0x70] ss:$8 sps:$4 sm:$0xff]   ;;  %v2009_v4 = vld [vmem:[#allocation5 + $0x64] ss:$8 sps:$4 sm:$0xff]  }
  0x68   : > { %2383 = vsyncadd (%p2703_p2), [#allocation9], 4294965248  ;;  %992 = vmatprep.subr.bf16.mxu0 %v2003_v0  ;;  %v2006_v2 = vld [vmem:[#allocation5 + $0x174] ss:$8 sps:$4 sm:$0xff]   ;;  %v2008_v3 = vld [vmem:[#allocation5 + $0x170] ss:$8 sps:$4 sm:$0xff]  }
  0x69   : > { %993 = vmatpush1.bf16.msra.mxu0 %v2005_v1  ;;  %v2011_v5 = vld [vmem:[#allocation5 + $0x60] ss:$8 sps:$4 sm:$0xff]   ;;  %1035 = vmatprep.subr.bf16.mxu1 %v2006_v2  ;;  %v2012_v6 = vld [vmem:[#allocation5 + $0x164] ss:$8 sps:$4 sm:$0xff]   ;;  %v2015_v8 = vld [vmem:[#allocation5 + $0x54] ss:$8 sps:$4 sm:$0xff]  }
  0x6a   : > { %1036 = vmatpush1.bf16.msra.mxu1 %v2008_v3  ;;  %994 = vmatprep.subr.bf16.mxu0 %v2009_v4  ;;  %v2014_v7 = vld [vmem:[#allocation5 + $0x160] ss:$8 sps:$4 sm:$0xff]   ;;  %v2017_v9 = vld [vmem:[#allocation5 + $0x50] ss:$8 sps:$4 sm:$0xff]   ;;  %v2018_v10 = vld [vmem:[#allocation5 + $0x154] ss:$8 sps:$4 sm:$0xff]  }
  0x6b   : > { %1037 = vmatprep.subr.bf16.mxu1 %v2012_v6  ;;  %v2021_v11 = vld [vmem:[#allocation5 + $0x44] ss:$8 sps:$4 sm:$0xff]   ;;  %v2020_v12 = vld [vmem:[#allocation5 + $0x150] ss:$8 sps:$4 sm:$0xff]   ;;  %v2023_v14 = vld [vmem:[#allocation5 + $0x40] ss:$8 sps:$4 sm:$0xff]  }
  0x6c   : > { %v2024_v13 = vld [vmem:[#allocation5 + $0x144] ss:$8 sps:$4 sm:$0xff]   ;;  %v2027_v15 = vld [vmem:[#allocation5 + $0x34] ss:$8 sps:$4 sm:$0xff]   ;;  %v2026_v16 = vld [vmem:[#allocation5 + $0x140] ss:$8 sps:$4 sm:$0xff]  }
  0x6d   : > { %995 = vmatpush1.bf16.msra.mxu0 %v2011_v5  ;;  %v2030_v17 = vld [vmem:[#allocation5 + $0x134] ss:$8 sps:$4 sm:$0xff]   ;;  %v2029_v18 = vld [vmem:[#allocation5 + $0x30] ss:$8 sps:$4 sm:$0xff]   ;;  %v2033_v19 = vld [vmem:[#allocation5 + $0x24] ss:$8 sps:$4 sm:$0xff]  }
  0x6e   : > { %996 = vmatprep.subr.bf16.mxu0 %v2015_v8  ;;  %1038 = vmatpush1.bf16.msra.mxu1 %v2014_v7  ;;  %v2032_v20 = vld [vmem:[#allocation5 + $0x130] ss:$8 sps:$4 sm:$0xff]   ;;  %v2036_v21 = vld [vmem:[#allocation5 + $0x124] ss:$8 sps:$4 sm:$0xff]   ;;  %v2035_v22 = vld [vmem:[#allocation5 + $0x20] ss:$8 sps:$4 sm:$0xff]  }
  0x6f   : > { %1039 = vmatprep.subr.bf16.mxu1 %v2018_v10  ;;  %v2039_v23 = vld [vmem:[#allocation5 + $0x14] ss:$8 sps:$4 sm:$0xff]   ;;  %v2038_v24 = vld [vmem:[#allocation5 + $0x120] ss:$8 sps:$4 sm:$0xff]   ;;  %v2041_v26 = vld [vmem:[#allocation5 + $0x10] ss:$8 sps:$4 sm:$0xff]  }
  0x70   : > { %v2042_v25 = vld [vmem:[#allocation5 + $0x114] ss:$8 sps:$4 sm:$0xff]   ;;  %v2045_v27 = vld [vmem:[#allocation5 + $0x4] ss:$8 sps:$4 sm:$0xff]   ;;  %v2044_v28 = vld [vmem:[#allocation5 + $0x110] ss:$8 sps:$4 sm:$0xff]  }
  0x71   : > { %997 = vmatpush1.bf16.msra.mxu0 %v2017_v9  ;;  %v2048_v29 = vld [vmem:[#allocation5 + $0x104] ss:$8 sps:$4 sm:$0xff]   ;;  %v2047_v30 = vld [vmem:[#allocation5] ss:$8 sps:$4 sm:$0xff]   ;;  %v2051_v31 = vld [vmem:[#allocation5 + $0xf4] ss:$8 sps:$4 sm:$0xff]  }
  0x72   : > { %998 = vmatprep.subr.bf16.mxu0 %v2021_v11  ;;  %1040 = vmatpush1.bf16.msra.mxu1 %v2020_v12  ;;  %v2050_v32 = vld [vmem:[#allocation5 + $0x100] ss:$8 sps:$4 sm:$0xff]   ;;  %v2054_v33 = vld [vmem:[#allocation5 + $0x1f4] ss:$8 sps:$4 sm:$0xff]   ;;  %v2053_v34 = vld [vmem:[#allocation5 + $0xf0] ss:$8 sps:$4 sm:$0xff]  }
  0x73   : > { %1041 = vmatprep.subr.bf16.mxu1 %v2024_v13  ;;  %v2057_v35 = vld [vmem:[#allocation5 + $0xe4] ss:$8 sps:$4 sm:$0xff]   ;;  %v2056_v36 = vld [vmem:[#allocation5 + $0x1f0] ss:$8 sps:$4 sm:$0xff]   ;;  %v2059_v38 = vld [vmem:[#allocation5 + $0xe0] ss:$8 sps:$4 sm:$0xff]  }
  0x74   : > { %v2060_v37 = vld [vmem:[#allocation5 + $0x1e4] ss:$8 sps:$4 sm:$0xff]   ;;  %v2063_v39 = vld [vmem:[#allocation5 + $0xd4] ss:$8 sps:$4 sm:$0xff]   ;;  %v2062_v40 = vld [vmem:[#allocation5 + $0x1e0] ss:$8 sps:$4 sm:$0xff]  }
  0x75   : > { %999 = vmatpush1.bf16.msra.mxu0 %v2023_v14  ;;  %v2066_v41 = vld [vmem:[#allocation5 + $0x1d4] ss:$8 sps:$4 sm:$0xff]   ;;  %v2065_v42 = vld [vmem:[#allocation5 + $0xd0] ss:$8 sps:$4 sm:$0xff]   ;;  %v2069_v43 = vld [vmem:[#allocation5 + $0xc4] ss:$8 sps:$4 sm:$0xff]  }
  0x76   : > { %1000 = vmatprep.subr.bf16.mxu0 %v2027_v15  ;;  %1042 = vmatpush1.bf16.msra.mxu1 %v2026_v16  ;;  %v2068_v44 = vld [vmem:[#allocation5 + $0x1d0] ss:$8 sps:$4 sm:$0xff]   ;;  %v2072_v45 = vld [vmem:[#allocation5 + $0x1c4] ss:$8 sps:$4 sm:$0xff]   ;;  %v2071_v46 = vld [vmem:[#allocation5 + $0xc0] ss:$8 sps:$4 sm:$0xff]  }
  0x77   : > { %1043 = vmatprep.subr.bf16.mxu1 %v2030_v17  ;;  %v2100_v47 = vld [vmem:[%s2597_s12 + $0x4] ss:$28 sps:$4 sm:$0xff]   ;;  %v2107_v51 = vld [vmem:[%s2597_s12 + $0xc] ss:$28 sps:$4 sm:$0xff]   ;;  %v2414_v12 = vmov 0   ;;  %vm988_vm0 = vcmask 130048  }
  0x78   : > { %v2075_v48 = vld [vmem:[#allocation5 + $0xb4] ss:$8 sps:$4 sm:$0xff]   ;;  %v2074_v49 = vld [vmem:[#allocation5 + $0x1c0] ss:$8 sps:$4 sm:$0xff]   ;;  %1024 = vmatprep.mubr.bf16.mxu0 %v2100_v47  ;;  %v2077_v52 = vld [vmem:[#allocation5 + $0xb0] ss:$8 sps:$4 sm:$0xff]   ;;  %1067 = vmatprep.mubr.bf16.mxu1 %v2107_v51 }
  0x79   : > { %1001 = vmatpush1.bf16.msra.mxu0 %v2029_v18  ;;  %v2078_v50 = vld [vmem:[#allocation5 + $0x1b4] ss:$8 sps:$4 sm:$0xff]   ;;  %v2081_v53 = vld [vmem:[#allocation5 + $0xa4] ss:$8 sps:$4 sm:$0xff]   ;;  %v2080_v54 = vld [vmem:[#allocation5 + $0x1b0] ss:$8 sps:$4 sm:$0xff]  }
  0x7a   : > { %1002 = vmatprep.subr.bf16.mxu0 %v2033_v19  ;;  %1044 = vmatpush1.bf16.msra.mxu1 %v2032_v20  ;;  %v2084_v55 = vld [vmem:[#allocation5 + $0x1a4] ss:$8 sps:$4 sm:$0xff]   ;;  %v2083_v56 = vld [vmem:[#allocation5 + $0xa0] ss:$8 sps:$4 sm:$0xff]   ;;  %v2087_v57 = vld [vmem:[#allocation5 + $0x94] ss:$8 sps:$4 sm:$0xff]  }
  0x7b   : > { %1045 = vmatprep.subr.bf16.mxu1 %v2036_v21  ;;  %v2086_v58 = vld [vmem:[#allocation5 + $0x1a0] ss:$8 sps:$4 sm:$0xff]   ;;  %v2090_v59 = vld [vmem:[#allocation5 + $0x194] ss:$8 sps:$4 sm:$0xff]   ;;  %v2089_v60 = vld [vmem:[#allocation5 + $0x90] ss:$8 sps:$4 sm:$0xff]  }
  0x7c   : > { %v2093_v61 = vld [vmem:[#allocation5 + $0x84] ss:$8 sps:$4 sm:$0xff]   ;;  %v2092_v62 = vld [vmem:[#allocation5 + $0x190] ss:$8 sps:$4 sm:$0xff]   ;;  %v2095_v0 = vld [vmem:[#allocation5 + $0x80] ss:$8 sps:$4 sm:$0xff]  }
  0x7d   : > { %1003 = vmatpush1.bf16.msra.mxu0 %v2035_v22  ;;  %v2096_v63 = vld [vmem:[#allocation5 + $0x184] ss:$8 sps:$4 sm:$0xff]   ;;  %v2104_v1 = vld [vmem:[#allocation5 + $0x274] ss:$8 sps:$4 sm:$0xff]   ;;  %v2101_v2 = vld [vmem:[#allocation5 + $0x180] ss:$8 sps:$4 sm:$0xff]  }
  0x7e   : > { %1004 = vmatprep.subr.bf16.mxu0 %v2039_v23  ;;  %1046 = vmatpush1.bf16.msra.mxu1 %v2038_v24  ;;  %v2098_v3 = vld [vmem:[%s2597_s12] ss:$28 sps:$4 sm:$0xff]   ;;  %v2105_v5 = vld [vmem:[%s2597_s12 + $0x8] ss:$28 sps:$4 sm:$0xff]   ;;  %v2156_v14 = vld [vmem:[%s2597_s12 + $0x18] ss:$28 sps:$4 sm:$0xff]  }
  0x7f   : > { %1047 = vmatprep.subr.bf16.mxu1 %v2042_v25  ;;  %v2102_v4 = vld [vmem:[#allocation5 + $0x270] ss:$8 sps:$4 sm:$0xff]   ;;  %v2110_v6 = vld [vmem:[#allocation5 + $0x264] ss:$8 sps:$4 sm:$0xff]   ;;  %v2150_v7 = vld [vmem:[#allocation5 + $0x300] ss:$8 sps:$4 sm:$0xff]  }
  0x80   : > { %v2152_v8 = vld [vmem:[#allocation5 + $0x304] ss:$8 sps:$4 sm:$0xff]   ;;  %v2108_v9 = vld [vmem:[#allocation5 + $0x260] ss:$8 sps:$4 sm:$0xff]   ;;  %v2113_v10 = vld [vmem:[#allocation5 + $0x254] ss:$8 sps:$4 sm:$0xff]  }
  0x81   : > { %1005 = vmatpush1.bf16.msra.mxu0 %v2041_v26  ;;  %v2111_v11 = vld [vmem:[#allocation5 + $0x250] ss:$8 sps:$4 sm:$0xff]   ;;  %v2116_v13 = vld [vmem:[#allocation5 + $0x244] ss:$8 sps:$4 sm:$0xff]   ;;  %v2114_v16 = vld [vmem:[#allocation5 + $0x240] ss:$8 sps:$4 sm:$0xff]  }
  0x82   : > { %1006 = vmatprep.subr.bf16.mxu0 %v2045_v27  ;;  %1048 = vmatpush1.bf16.msra.mxu1 %v2044_v28  ;;  %v2159_v15 = vld [vmem:[%s2597_s12 + $0x14] ss:$28 sps:$4 sm:$0xff]   ;;  %s1730_s14 = sshll.u32 %s2593_s22, 4  ;;  %s1891_s1 = sshll.u32 %s2479_s28, 8 }
  0x83   : > { %1049 = vmatprep.subr.bf16.mxu1 %v2048_v29  ;;  %v2119_v17 = vld [vmem:[#allocation5 + $0x234] ss:$8 sps:$4 sm:$0xff]   ;;  %v2117_v18 = vld [vmem:[#allocation5 + $0x230] ss:$8 sps:$4 sm:$0xff]   ;;  %v2122_v19 = vld [vmem:[#allocation5 + $0x224] ss:$8 sps:$4 sm:$0xff]   ;;  %s2634_s29 = scalar_lea.hbm %s2684_s7, %s1891_s1 }
  0x84   : > { %v2120_v20 = vld [vmem:[#allocation5 + $0x220] ss:$8 sps:$4 sm:$0xff]   ;;  %v2125_v21 = vld [vmem:[#allocation5 + $0x214] ss:$8 sps:$4 sm:$0xff]   ;;  %v2123_v22 = vld [vmem:[#allocation5 + $0x210] ss:$8 sps:$4 sm:$0xff]  }
  0x85   : > { %1007 = vmatpush1.bf16.msra.mxu0 %v2047_v30  ;;  %v2128_v23 = vld [vmem:[#allocation5 + $0x204] ss:$8 sps:$4 sm:$0xff]   ;;  %v2126_v24 = vld [vmem:[#allocation5 + $0x200] ss:$8 sps:$4 sm:$0xff]   ;;  %v2131_v25 = vld [vmem:[#allocation5 + $0x2f4] ss:$8 sps:$4 sm:$0xff]  }
  0x86   : > { %1008 = vmatprep.subr.bf16.mxu0 %v2051_v31  ;;  %1050 = vmatpush1.bf16.msra.mxu1 %v2050_v32  ;;  %v2129_v26 = vld [vmem:[#allocation5 + $0x2f0] ss:$8 sps:$4 sm:$0xff]   ;;  %v2134_v27 = vld [vmem:[#allocation5 + $0x2e4] ss:$8 sps:$4 sm:$0xff]   ;;  %v2132_v28 = vld [vmem:[#allocation5 + $0x2e0] ss:$8 sps:$4 sm:$0xff]  }
  0x87   : > { %1051 = vmatprep.subr.bf16.mxu1 %v2054_v33  ;;  %v2137_v29 = vld [vmem:[#allocation5 + $0x2d4] ss:$8 sps:$4 sm:$0xff]   ;;  %v2135_v30 = vld [vmem:[#allocation5 + $0x2d0] ss:$8 sps:$4 sm:$0xff]   ;;  %v2140_v31 = vld [vmem:[#allocation5 + $0x2c4] ss:$8 sps:$4 sm:$0xff]  }
  0x88   : > { %v2138_v32 = vld [vmem:[#allocation5 + $0x2c0] ss:$8 sps:$4 sm:$0xff]   ;;  %v2143_v33 = vld [vmem:[#allocation5 + $0x2b4] ss:$8 sps:$4 sm:$0xff]   ;;  %s341_s13 = scalar_lea.vmem [#allocation10], %s1730_s14  ;;  %p2704_p6 = scmp.ne.s32.totalorder %s2696_s21, 0 }
  0x89   : > { %1009 = vmatpush2.bf16.msra.mxu0 %v2053_v34  ;;  %v2141_v34 = vld [vmem:[#allocation5 + $0x2b0] ss:$8 sps:$4 sm:$0xff]   ;;  %v2166_v47 = vld [vmem:[#allocation7 + $0x50] ss:$8 sps:$4 sm:$0xff]   ;;  %s1615_s19 = sshll.u32 %s341_s13, 4  ;;  %s2415_s28 = smov [#allocation10]   ;;  %s2629_s19 = int_to_ptr.vmem [resolvable:$true] %s1615_s19 }
  0x8a   : > { %1010 = vmatprep.subr.bf16.mxu0 %v2057_v35  ;;  %1052 = vmatpush2.bf16.msra.mxu1 %v2056_v36  ;;  %v2146_v35 = vld [vmem:[#allocation5 + $0x2a4] ss:$8 sps:$4 sm:$0xff]   ;;  %v2144_v36 = vld [vmem:[#allocation5 + $0x2a0] ss:$8 sps:$4 sm:$0xff]   ;;  %s2330_s30 = scalar_lea.vmem %s2629_s19, 256  ;;  %s2334_s9 = sshll.u32 %s2415_s28, 4  ;;  %s2335_s9 = int_to_ptr.vmem [resolvable:$false] %s2334_s9 }
  0x8b   : > { %1053 = vmatprep.subr.bf16.mxu1 %v2060_v37  ;;  %v2149_v37 = vld [vmem:[#allocation5 + $0x294] ss:$8 sps:$4 sm:$0xff]   ;;  %v2172_v51 = vld [vmem:[#allocation7 + $0x30] ss:$8 sps:$4 sm:$0xff]   ;;  %p2331_p4 = scmp.ne.s32.totalorder %s2629_s19, %s2330_s30  ;;  %s2336_s10 = scalar_lea.vmem %s2335_s9, 512 }
  0x8c   : > { %p2337_p5 = scmp.lt.s32.totalorder %s2629_s19, %s2335_s9  ;;  %p2338_p3 = scmp.lt.s32.totalorder %s2336_s10, %s2330_s30 }
  0x8d   : > { %1011 = vmatpush2.bf16.msra.mxu0 %v2059_v38  ;;  %v2147_v38 = vld [vmem:[#allocation5 + $0x290] ss:$8 sps:$4 sm:$0xff]   ;;  %p2332_p12 = pnand %p2331_p4, %p2704_p6 }
  0x8e   : > { %1012 = vmatprep.subr.bf16.mxu0 %v2063_v39  ;;  %1054 = vmatpush2.bf16.msra.mxu1 %v2062_v40  ;;  %v2155_v39 = vld [vmem:[#allocation5 + $0x284] ss:$8 sps:$4 sm:$0xff]   ;;  %v2153_v40 = vld [vmem:[#allocation5 + $0x280] ss:$8 sps:$4 sm:$0xff]   ;;  %p2339_p7 = por %p2338_p3, %p2337_p5 }
  0x8f   : > { %1055 = vmatprep.subr.bf16.mxu1 %v2066_v41  ;;  %v2157_v41 = vld [vmem:[%s2597_s12 + $0x10] ss:$28 sps:$4 sm:$0xff]   ;;  %s1602_s12 = scalar_lea.sflag [#allocation4], %s2593_s22  ;;  %p2333_p0 = pneg %p2332_p12 }
  0x91   : > { %1013 = vmatpush2.bf16.msra.mxu0 %v2065_v42  ;;  %v2160_v42 = vld [vmem:[#allocation7 + $0x70] ss:$8 sps:$4 sm:$0xff]   ;;  %p2340_p9 = pnand %p2339_p7, %p2333_p0 }
  0x92   : > { %1014 = vmatprep.subr.bf16.mxu0 %v2069_v43  ;;  %1056 = vmatpush2.bf16.msra.mxu1 %v2068_v44  ;;  %v2162_v43 = vld [vmem:[#allocation7 + $0x74] ss:$8 sps:$4 sm:$0xff]   ;;  %v2165_v44 = vld [vmem:[#allocation7 + $0x64] ss:$8 sps:$4 sm:$0xff]  }
  0x93   : > { %1057 = vmatprep.subr.bf16.mxu1 %v2072_v45  ;;  %v2163_v45 = vld [vmem:[#allocation7 + $0x60] ss:$8 sps:$4 sm:$0xff]  }
  0x95   : > { %1015 = vmatpush2.bf16.msra.mxu0 %v2071_v46  ;;  %v2168_v46 = vld [vmem:[#allocation7 + $0x54] ss:$8 sps:$4 sm:$0xff]  }
  0x96   : > { %1016 = vmatprep.subr.bf16.mxu0 %v2075_v48  ;;  %1058 = vmatpush2.bf16.msra.mxu1 %v2074_v49  ;;  %v2171_v48 = vld [vmem:[#allocation7 + $0x44] ss:$8 sps:$4 sm:$0xff]   ;;  %v2169_v49 = vld [vmem:[#allocation7 + $0x40] ss:$8 sps:$4 sm:$0xff]  }
  0x97   : > { %1059 = vmatprep.subr.bf16.mxu1 %v2078_v50  ;;  %v2174_v50 = vld [vmem:[#allocation7 + $0x34] ss:$8 sps:$4 sm:$0xff]  }
  0x99   : > { %1017 = vmatpush2.bf16.msra.mxu0 %v2077_v52  ;;  %v2177_v52 = vld [vmem:[#allocation7 + $0x24] ss:$8 sps:$4 sm:$0xff]  }
  0x9a   : > { %1018 = vmatprep.subr.bf16.mxu0 %v2081_v53  ;;  %1060 = vmatpush2.bf16.msra.mxu1 %v2080_v54  ;;  %v2175_v53 = vld [vmem:[#allocation7 + $0x20] ss:$8 sps:$4 sm:$0xff]   ;;  %v2180_v54 = vld [vmem:[#allocation7 + $0x14] ss:$8 sps:$4 sm:$0xff]  }
  0x9b   : > { %1061 = vmatprep.subr.bf16.mxu1 %v2084_v55  ;;  %v2178_v55 = vld [vmem:[#allocation7 + $0x10] ss:$8 sps:$4 sm:$0xff]  }
  0x9d   : > { %1019 = vmatpush2.bf16.msra.mxu0 %v2083_v56  ;;  %v2183_v56 = vld [vmem:[#allocation7 + $0x4] ss:$8 sps:$4 sm:$0xff]  }
  0x9e   : > { %1020 = vmatprep.subr.bf16.mxu0 %v2087_v57  ;;  %1062 = vmatpush2.bf16.msra.mxu1 %v2086_v58  ;;  %v2181_v57 = vld [vmem:[#allocation7] ss:$8 sps:$4 sm:$0xff]   ;;  %v2186_v58 = vld [vmem:[#allocation7 + $0xf4] ss:$8 sps:$4 sm:$0xff]  }
  0x9f   : > { %1063 = vmatprep.subr.bf16.mxu1 %v2090_v59  ;;  %v2184_v59 = vld [vmem:[#allocation7 + $0xf0] ss:$8 sps:$4 sm:$0xff]  }
  0xa1   : > { %1021 = vmatpush2.bf16.msra.mxu0 %v2089_v60  ;;  %v2189_v60 = vld [vmem:[#allocation7 + $0xe4] ss:$8 sps:$4 sm:$0xff]  }
  0xa2   : > { %1022 = vmatprep.subr.bf16.mxu0 %v2093_v61  ;;  %1064 = vmatpush2.bf16.msra.mxu1 %v2092_v62  ;;  %v2187_v61 = vld [vmem:[#allocation7 + $0xe0] ss:$8 sps:$4 sm:$0xff]   ;;  %v2192_v62 = vld [vmem:[#allocation7 + $0xd4] ss:$8 sps:$4 sm:$0xff]  }
  0xa3   : > { %1065 = vmatprep.subr.bf16.mxu1 %v2096_v63  ;;  %v2190_v63 = vld [vmem:[#allocation7 + $0xd0] ss:$8 sps:$4 sm:$0xff]  }
  0xa5   : > { %1023 = vmatpush2.bf16.msra.mxu0 %v2095_v0  ;;  %v2195_v0 = vld [vmem:[#allocation7 + $0xc4] ss:$8 sps:$4 sm:$0xff]  }
  0xa6   : > { %1078 = vmatprep.subr.bf16.mxu0 %v2104_v1  ;;  %1066 = vmatpush2.bf16.msra.mxu1 %v2101_v2  ;;  %v2193_v1 = vld [vmem:[#allocation7 + $0xc0] ss:$8 sps:$4 sm:$0xff]   ;;  %v2198_v2 = vld [vmem:[#allocation7 + $0xb4] ss:$8 sps:$4 sm:$0xff]  }
  0xa7   : > { %1135 = vmatprep.subr.bf16.mxu1 %v2152_v8  ;;  %v2207_v8 = vld [vmem:[#allocation7 + $0x84] ss:$8 sps:$4 sm:$0xff]  }
  0xa8   : > { %1025 = vmatmul.mubr.bf16.vlgmr.msra.gmra.mxu0 %v2098_v3  ;;  %v2196_v3 = vld [vmem:[#allocation7 + $0xb0] ss:$8 sps:$4 sm:$0xff]  }
  0xa9   : > { %1079 = vmatpush1.bf16.msra.mxu0 %v2102_v4  ;;  %1068 = vmatmul.mubr.bf16.vlgmr.msra.gmra.mxu1 %v2105_v5  ;;  %v2201_v4 = vld [vmem:[#allocation7 + $0xa4] ss:$8 sps:$4 sm:$0xff]   ;;  %v2199_v5 = vld [vmem:[#allocation7 + $0xa0] ss:$8 sps:$4 sm:$0xff]  }
  0xaa   : > { %1080 = vmatprep.subr.bf16.mxu0 %v2110_v6  ;;  %1153 = vmatprep.mubr.bf16.mxu1 %v2414_v12  ;;  %v2204_v6 = vld [vmem:[#allocation7 + $0x94] ss:$8 sps:$4 sm:$0xff]  }
  0xab   : > { %1136 = vmatpush1.bf16.msra.mxu1 %v2150_v7  ;;  %1110 = vmatprep.mubr.bf16.mxu0 %v2159_v15  ;;  %v2202_v7 = vld [vmem:[#allocation7 + $0x90] ss:$8 sps:$4 sm:$0xff]   ;;  %v2213_v15 = vld [vmem:[#allocation8 + $0x28] sm:$0xff]  }
  0xac   : > { %1374 = vmatprep.subr.bf16.mxu1 %v2162_v43  ;;  %v2210_v12 = vld [vmem:[#allocation8 + $0x70] sm:$0xff]  }
  0xad   : > { %1081 = vmatpush1.bf16.msra.mxu0 %v2108_v9  ;;  %v2205_v9 = vld [vmem:[#allocation7 + $0x80] ss:$8 sps:$4 sm:$0xff]  }
  0xae   : > { %1082 = vmatprep.subr.bf16.mxu0 %v2113_v10  ;;  %v2208_v10 = vld [vmem:[#allocation8 + $0x78] sm:$0xff]  }
  0xb1   : > { %1083 = vmatpush1.bf16.msra.mxu0 %v2111_v11  ;;  %1836 = vmatmul.mubr.msk.bf16.vlgmr.msra.gmra.mxu1 %vm988_vm0, %v2156_v14  ;;  %v2209_v11 = vld [vmem:[#allocation8 + $0x38] sm:$0xff]   ;;  %v2212_v14 = vld [vmem:[#allocation8 + $0x68] sm:$0xff]  }
  0xb2   : > { %1084 = vmatprep.subr.bf16.mxu0 %v2116_v13  ;;  %1375 = vmatpush1.bf16.msra.mxu1 %v2160_v42  ;;  %v2211_v13 = vld [vmem:[#allocation8 + $0x30] sm:$0xff]  }
  0xb3   : > { %1376 = vmatprep.subr.bf16.mxu1 %v2165_v44 }
  0xb5   : > { %1085 = vmatpush1.bf16.msra.mxu0 %v2114_v16  ;;  %v2214_v16 = vld [vmem:[#allocation8 + $0x60] sm:$0xff]  }
  0xb6   : > { %1086 = vmatprep.subr.bf16.mxu0 %v2119_v17  ;;  %1377 = vmatpush1.bf16.msra.mxu1 %v2163_v45  ;;  %v2215_v17 = vld [vmem:[#allocation8 + $0x20] sm:$0xff]  }
  0xb7   : > { %1378 = vmatprep.subr.bf16.mxu1 %v2168_v46 }
  0xb9   : > { %1087 = vmatpush1.bf16.msra.mxu0 %v2117_v18  ;;  %v2216_v18 = vld [vmem:[#allocation8 + $0x58] sm:$0xff]  }
  0xba   : > { %1088 = vmatprep.subr.bf16.mxu0 %v2122_v19  ;;  %1379 = vmatpush1.bf16.msra.mxu1 %v2166_v47  ;;  %v2217_v19 = vld [vmem:[#allocation8 + $0x18] sm:$0xff]  }
  0xbb   : > { %1380 = vmatprep.subr.bf16.mxu1 %v2171_v48 }
  0xbd   : > { %1089 = vmatpush1.bf16.msra.mxu0 %v2120_v20  ;;  %v453_v20 = vlaneseq }
  0xbe   : > { %1090 = vmatprep.subr.bf16.mxu0 %v2125_v21  ;;  %1381 = vmatpush1.bf16.msra.mxu1 %v2169_v49 }
  0xbf   : > { %1382 = vmatprep.subr.bf16.mxu1 %v2174_v50 }
  0xc1   : > { %1091 = vmatpush1.bf16.msra.mxu0 %v2123_v22  ;;  %v454_v22 = vshrl.u32 %v453_v20, 7 }
  0xc2   : > { %1092 = vmatprep.subr.bf16.mxu0 %v2128_v23  ;;  %1383 = vmatpush1.bf16.msra.mxu1 %v2172_v51 }
  0xc3   : > { %1384 = vmatprep.subr.bf16.mxu1 %v2177_v52 }
  0xc5   : > { %1093 = vmatpush1.bf16.msra.mxu0 %v2126_v24 }
  0xc6   : > { %1094 = vmatprep.subr.bf16.mxu0 %v2131_v25  ;;  %1385 = vmatpush1.bf16.msra.mxu1 %v2175_v53  ;;  %v459_v25 = vsub.s32 1, %v454_v22 }
  0xc7   : > { %1386 = vmatprep.subr.bf16.mxu1 %v2180_v54 }
  0xc9   : > { %1095 = vmatpush2.bf16.msra.mxu0 %v2129_v26  ;;  %v451_v26 = vld [vmem:[%s2679_s2] sm:$0x3] }
  0xca   : > { %1096 = vmatprep.subr.bf16.mxu0 %v2134_v27  ;;  %1387 = vmatpush1.bf16.msra.mxu1 %v2178_v55  ;;  %v455_v27 = vsub.s32 0, %v454_v22 }
  0xcb   : > { %1388 = vmatprep.subr.bf16.mxu1 %v2183_v56 }
  0xcd   : > { %1097 = vmatpush2.bf16.msra.mxu0 %v2132_v28 }
  0xce   : > { %1098 = vmatprep.subr.bf16.mxu0 %v2137_v29  ;;  %1389 = vmatpush1.bf16.msra.mxu1 %v2181_v57 }
  0xcf   : > { %1390 = vmatprep.subr.bf16.mxu1 %v2186_v58 }
  0xd1   : > { %1099 = vmatpush2.bf16.msra.mxu0 %v2135_v30  ;;  %v460_v30 = vrot.slane %v451_v26, %v459_v25 }
  0xd2   : > { %1100 = vmatprep.subr.bf16.mxu0 %v2140_v31  ;;  %1391 = vmatpush2.bf16.msra.mxu1 %v2184_v59  ;;  %v456_v31 = vrot.slane %v451_v26, %v455_v27 }
  0xd3   : > { %1392 = vmatprep.subr.bf16.mxu1 %v2189_v60 }
  0xd5   : > { %1101 = vmatpush2.bf16.msra.mxu0 %v2138_v32 }
  0xd6   : > { %1102 = vmatprep.subr.bf16.mxu0 %v2143_v33  ;;  %1393 = vmatpush2.bf16.msra.mxu1 %v2187_v61 }
  0xd7   : > { %1394 = vmatprep.subr.bf16.mxu1 %v2192_v62 }
  0xd9   : > { %1103 = vmatpush2.bf16.msra.mxu0 %v2141_v34 }
  0xda   : > { %1104 = vmatprep.subr.bf16.mxu0 %v2146_v35  ;;  %1395 = vmatpush2.bf16.msra.mxu1 %v2190_v63 }
  0xdb   : > { %1396 = vmatprep.subr.bf16.mxu1 %v2195_v0 }
  0xdd   : > { %1105 = vmatpush2.bf16.msra.mxu0 %v2144_v36 }
  0xde   : > { %1106 = vmatprep.subr.bf16.mxu0 %v2149_v37  ;;  %1397 = vmatpush2.bf16.msra.mxu1 %v2193_v1  ;;  %v2218_v1 = vld [vmem:[#allocation8 + $0x50] sm:$0xff]  }
  0xdf   : > { %1398 = vmatprep.subr.bf16.mxu1 %v2198_v2  ;;  %v2219_v2 = vld [vmem:[#allocation8 + $0x10] sm:$0xff]  }
  0xe1   : > { %1107 = vmatpush2.bf16.msra.mxu0 %v2147_v38 }
  0xe2   : > { %1108 = vmatprep.subr.bf16.mxu0 %v2155_v39  ;;  %1399 = vmatpush2.bf16.msra.mxu1 %v2196_v3  ;;  %v2220_v3 = vld [vmem:[#allocation8 + $0x48] sm:$0xff]  }
  0xe3   : > { %1400 = vmatprep.subr.bf16.mxu1 %v2201_v4  ;;  %v2221_v4 = vld [vmem:[#allocation8 + $0x8] sm:$0xff]  }
  0xe5   : > { %1109 = vmatpush2.bf16.msra.mxu0 %v2153_v40 }
  0xe6   : > { %1401 = vmatpush2.bf16.msra.mxu1 %v2199_v5  ;;  %1892 = vmatprep.subr.bf16.mxu0 %v2208_v10  ;;  %v2222_v5 = vld [vmem:[#allocation8 + $0x40] sm:$0xff]  }
  0xe7   : > { %1402 = vmatprep.subr.bf16.mxu1 %v2204_v6  ;;  %v2223_v6 = vld [vmem:[#allocation8] sm:$0xff]  }
  0xe8   : > { %1111 = vmatmul.mubr.bf16.vlgmr.msra.gmra.mxu0 %v2157_v41 }
  0xe9   : > { %1893 = vmatpush3.bf16.msra.mxu0 %v2209_v11 }
  0xea   : > { %1403 = vmatpush2.bf16.msra.mxu1 %v2202_v7  ;;  %1894 = vmatprep.subr.bf16.mxu0 %v2210_v12  ;;  %v1202_v7 = vld [vmem:[%s2681_s4] sm:$0x3] }
  0xeb   : > { %1404 = vmatprep.subr.bf16.mxu1 %v2207_v8  ;;  %v1207_v10 = vrot.slane %v1202_v7, %v455_v27 }
  0xed   : > { %1895 = vmatpush3.bf16.msra.mxu0 %v2211_v13 }
  0xee   : > { %1405 = vmatpush2.bf16.msra.mxu1 %v2205_v9  ;;  %1896 = vmatprep.subr.bf16.mxu0 %v2212_v14  ;;  %v1211_v9 = vrot.slane %v1202_v7, %v459_v25  ;;  %v1869_v25 = vld [vmem:[%s2683_s6] ss:$0 sm:$0xff] }
  0xf1   : > { %1897 = vmatpush3.bf16.msra.mxu0 %v2213_v15 }
  0xf2   : > { %1898 = vmatprep.subr.bf16.mxu0 %v2214_v16 }
  0xf5   : > { %1899 = vmatpush3.bf16.msra.mxu0 %v2215_v17 }
  0xf6   : > { %1900 = vmatprep.subr.bf16.mxu0 %v2216_v18 }
  0xf9   : > { %1901 = vmatpush3.bf16.msra.mxu0 %v2217_v19 }
  0xfa   : > { %1902 = vmatprep.subr.bf16.mxu0 %v2218_v1 }
  0xfd   : > { %1903 = vmatpush3.bf16.msra.mxu0 %v2219_v2 }
  0xfe   : > { %1904 = vmatprep.subr.bf16.mxu0 %v2220_v3 }
 0x101   : > { %1905 = vmatpush3.bf16.msra.mxu0 %v2221_v4 }
 0x102   : > { %1906 = vmatprep.subr.bf16.mxu0 %v2222_v5 }
 0x105   : > { %1907 = vmatpush3.bf16.msra.mxu0 %v2223_v6 }
 0x168   : > { %v1026_v23 = vpop.f32.mrf.mxu0 }
 0x169   : > { %v1069_v21 = vpop.f32.mrf.mxu1  ;;  %v1027_v36 = vadd.f32 %v1026_v23, %v456_v31 }
 0x16a   : > { %v1028_v28 = vpop.f32.mrf.mxu0 }
 0x16b   : > { %v1071_v24 = vpop.f32.mrf.mxu1  ;;  %v1029_v35 = vadd.f32 %v1028_v28, %v460_v30  ;;  %v1070_v43 = vadd.f32 %v1069_v21, %v1027_v36 }
 0x16c   : > { %v1030_v32 = vpop.f32.mrf.mxu0 }
 0x16d   : > { %v1073_v29 = vpop.f32.mrf.mxu1  ;;  %v1031_v38 = vadd.f32 %v1030_v32, %v456_v31  ;;  %v1072_v41 = vadd.f32 %v1071_v24, %v1029_v35 }
 0x16e   : > { %v1032_v37 = vpop.f32.mrf.mxu0 }
 0x16f   : > { %v1075_v33 = vpop.f32.mrf.mxu1  ;;  %v1033_v42 = vadd.f32 %v1032_v37, %v460_v30  ;;  %v1074_v45 = vadd.f32 %v1073_v29, %v1031_v38 }
 0x171   : > { %v1155_v34 = vpop.f32.mrf.mxu1  ;;  %v1076_v50 = vadd.f32 %v1075_v33, %v1033_v42 }
 0x173   : > { %v1157_v39 = vpop.f32.mrf.mxu1 }
 0x175   : > { %v1159_v48 = vpop.f32.mrf.mxu1 }
 0x177   : > { %v1161_v57 = vpop.f32.mrf.mxu1 }
 0x1a8   : > { %v1112_v40 = vpop.f32.mrf.mxu0 }
 0x1a9   : > { %v1113_v47 = vadd.f32 %v1112_v40, %v1070_v43 }
 0x1aa   : > { %v1114_v44 = vpop.f32.mrf.mxu0 }
 0x1ab   : > { %v1115_v46 = vadd.f32 %v1114_v44, %v1072_v41  ;;  %v1156_v56 = vadd.f32 %v1155_v34, %v1113_v47 }
 0x1ac   : > { %v1116_v49 = vpop.f32.mrf.mxu0 }
 0x1ad   : > { %v1117_v51 = vadd.f32 %v1116_v49, %v1074_v45  ;;  %v1158_v53 = vadd.f32 %v1157_v39, %v1115_v46  ;;  %v1164_v62 = vmax.f32 %v1156_v56, 0.0 }
 0x1ae   : > { %v1118_v52 = vpop.f32.mrf.mxu0 }
 0x1af   : > { %v1160_v54 = vadd.f32 %v1159_v48, %v1117_v51  ;;  %v1119_v55 = vadd.f32 %v1118_v52, %v1076_v50  ;;  %v1165_v60 = vmax.f32 %v1158_v53, 0.0 }
 0x1b1   : > { %v1162_v58 = vadd.f32 %v1161_v57, %v1119_v55  ;;  %v1166_v59 = vmax.f32 %v1160_v54, 0.0 }
 0x1b3   : > { %v1167_v61 = vmax.f32 %v1162_v58, 0.0  ;;  %v1168_v0 = vpack.c.bf16 %v1166_v59, %v1164_v62 }
 0x1b5   : > { %v1169_v63 = vpack.c.bf16 %v1167_v61, %v1165_v60 }
 0x1b7   : > { %1406 = vmatprep.mubr.bf16.mxu1 %v1169_v63 }
 0x1b8   : > { %1407 = vmatmul.mubr.bf16.vlgmr.msra.gmra.mxu1 %v1168_v0 }
 0x278   : > { %v1408_v8 = vpop.f32.mrf.mxu1 }
 0x279   : > { %v1409_v15 = vadd.f32 %v1408_v8, %v1207_v10 }
 0x27a   : > { %v1410_v11 = vpop.f32.mrf.mxu1 }
 0x27b   : > { %v1411_v13 = vadd.f32 %v1410_v11, %v1211_v9  ;;  %v1417_v21 = vmax.f32 %v1409_v15, 0.0 }
 0x27c   : > { %v1412_v12 = vpop.f32.mrf.mxu1 }
 0x27d   : > { %v1413_v14 = vadd.f32 %v1412_v12, %v1207_v10  ;;  %v1418_v19 = vmax.f32 %v1411_v13, 0.0 }
 0x27e   : > { %v1414_v16 = vpop.f32.mrf.mxu1 }
 0x27f   : > { %v1415_v17 = vadd.f32 %v1414_v16, %v1211_v9  ;;  %v1419_v18 = vmax.f32 %v1413_v14, 0.0 }
 0x281   : > { %v1420_v20 = vmax.f32 %v1415_v17, 0.0  ;;  %v1421_v23 = vpack.c.bf16 %v1419_v18, %v1417_v21 }
 0x283   : > { %v1422_v22 = vpack.c.bf16 %v1420_v20, %v1418_v19 }
 0x285   : > { %1590 = vmatprep.mubr.bf16.mxu0 %v1422_v22 }
 0x286   : > { %1591 = vmatmul.mubr.bf16.vlgmr.msra.gmra.mxu0 %v1421_v23 }
 0x346   : > { %v1908_v24 = vpop.f32.mrf.mxu0 }
 0x348   : > { %v1909_v26 = vpop.f32.mrf.mxu0 }
 0x349   : > { %v1910_v27 = vadd.f32 %v1909_v26, %v1908_v24 }
 0x34a   : > { %v1911_v28 = vpop.f32.mrf.mxu0 }
 0x34b   : > { %v1593_v29 = vadd.f32 %v1910_v27, %v1869_v25 }
 0x34c   : > { %v1912_v30 = vpop.f32.mrf.mxu0 }
 0x34d   : > { %1599 = vst [vmem:[%s341_s13] sm:$0xff] %v1593_v29  ;;  %v1913_v31 = vadd.f32 %v1912_v30, %v1911_v28 }
 0x34f   : > { %v1596_v32 = vadd.f32 %v1913_v31, %v1869_v25 }
 0x351   : > { %1600 = vst [vmem:[%s341_s13 + $0x8] sm:$0xff] %v1596_v32 }
 0x352   : > { %2343 = shalt.err (!%p2340_p9)
}
 0x353   : > { %s2344_s11 = scalar_lea.hbm %s2634_s29, 256  ;;  %s2348_s16 = scalar_lea.hbm %s2684_s7, 512 }
 0x354   : > { %p2345_p1 = scmp.ne.s32.totalorder %s2634_s29, %s2344_s11  ;;  %p2349_p11 = scmp.lt.s32.totalorder %s2634_s29, %s2684_s7 }
 0x355   : > { %p2350_p13 = scmp.lt.s32.totalorder %s2348_s16, %s2344_s11 }
 0x356   : > { %p2346_p8 = pnand %p2345_p1, %p2704_p6 }
 0x357   : > { %p2351_p2 = por %p2350_p13, %p2349_p11 }
 0x358   : > { %p2347_p10 = pneg %p2346_p8 }
 0x35a   : > { %p2352_p4 = pnand %p2351_p2, %p2347_p10 }
 0x35c   : > { %2355 = shalt.err (!%p2352_p4)
}
 0x35d   : > { %s2416_s18 = smov 128   ;;  %s2417_s23 = smov 8  }
 0x35e   : > { %1931 = dma.vmem_to_hbm [thread:$0]  (%p2704_p6), %s2629_s19, 256, %s2634_s29, %s1602_s12, %s2416_s18, %s2416_s18, %s2417_s23  }
 0x35f PF: > { %s1630_s30 = sand.u32 1, %s2390_s24   ;;  %p2705_p12 = scmp.ne.s32.totalorder %s2691_s8, 0 }
 0x360   : > { %p2706_p0 = scmp.ge.s32.totalorder %s2402_s27, 2  ;;  %s1631_s28 = scalar_lea.sflag [#allocation4], %s1630_s30 }
 0x362   : > { %p1948_p5 = pnand %p2706_p0, %p2705_p12 }
 0x364   : > { %p1949_p3 = pneg %p1948_p5 }
 0x366   : > { %2385 = dma.done.wait (%p1949_p3), %s1631_s28, 256  }
 0x367   : > { %2387 = vsyncadd (%p1949_p3), %s1631_s28, 4294967040  ;;  %p22_p7 = scmp.ge.s32.totalorder %s2538_s17, 4   ;;  %s2707_s24 = smov %s2394_s25 }
 0x368   : > { %s2708_s25 = smov %s2398_s26  ;;  %s2709_s26 = smov %s2548_s20 }
 0x369   : > { %s2710_s27 = smov %s2538_s17  ;;  %24 = sbr.rel (!%p22_p7) target bundleno = 9 (0x9), region = 105 }
 0x36e   :  { %1636 = vsyncpa [#allocation3], 1 }
 0x36f   :  { %1638 = vsyncpa [#allocation3 + $0x1], 1 }
 0x370   :  { %1639 = vsyncpa [#allocation6], 1 }
 0x371   :  { %1640 = vsyncpa [#allocation9], 1 }
 0x372   :  { %1641 = vsyncpa [#allocation4], 1 }
 0x373   :  { %1643 = vsyncpa [#allocation4 + $0x1], 1 }

</bundles_post_ra>
